<compile_context>
chip_gen: v6e
topology: v6e:2x2x1
jax: 0.10.0
libtpu: 0.0.40
codegen_flags: <defaults>
</compile_context>

<pallas_src>
import functools

import jax
import jax.numpy as jnp
from jax.experimental import pallas as pl
from jax.experimental.pallas import tpu as pltpu

_LEAKY_SLOPE = 0.2
_DROPOUT_P = 0.1


def _round_up(x, m):
  return ((x + m - 1) // m) * m


def _mlp_kernel(x_ref, w1_ref, b1_ref, w2_ref, b2_ref, o_ref, *,
                slope, training, dropout_p, seed):
  """Fused: (TB, Din) @ (Din, H) + b1 -> leaky -> @ (H, Dout) + b2 -> leaky -> dropout."""
  x = x_ref[...]                                               # (TB, Din_p)

  h = jnp.dot(x, w1_ref[...], preferred_element_type=jnp.float32)
  h = h + b1_ref[...]                                          # (TB, H_p), bias broadcast once
  h = jnp.where(h > 0, h, slope * h)                           # LeakyReLU(0.2)

  y = jnp.dot(h, w2_ref[...], preferred_element_type=jnp.float32)
  y = y + b2_ref[...]                                          # (TB, Dout_p)
  y = jnp.where(y > 0, y, slope * y)                           # LeakyReLU(0.2)

  if training and dropout_p > 0.0:
    # Inverted dropout with the hardware PRNG (per-grid-step seed).
    pltpu.prng_seed(seed + pl.program_id(0))
    bits = pltpu.prng_random_bits(y.shape)
    r = jax.lax.shift_right_logical(bits, 8).astype(jnp.int32)  # uniform in [0, 2^24)
    keep = r >= int(dropout_p * (1 << 24))
    y = jnp.where(keep, y * (1.0 / (1.0 - dropout_p)), jnp.zeros_like(y))

  o_ref[...] = y.astype(o_ref.dtype)


def feature_extractor(x, params, *, training=False, dropout_p=_DROPOUT_P,
                      seed=0, block_rows=128):
  """x: (N, Din) float32.  params: (w1 (Din,H), b1 (H,), w2 (H,Dout), b2 (Dout,))."""
  w1, b1, w2, b2 = params
  N, Din = x.shape
  H = w1.shape[1]
  Dout = w2.shape[1]

  # Lane-dense padding (multiples of 128 on feature dims) + sublane-aligned row tile.
  Din_p = _round_up(Din, 128)
  H_p = _round_up(H, 128)
  Dout_p = _round_up(Dout, 128)
  TB = min(_round_up(N, 8), block_rows)
  N_p = _round_up(N, TB)

  x_p = jnp.zeros((N_p, Din_p), x.dtype).at[:N, :Din].set(x)
  w1_p = jnp.zeros((Din_p, H_p), w1.dtype).at[:Din, :H].set(w1)
  b1_p = jnp.zeros((1, H_p), b1.dtype).at[0, :H].set(b1)
  w2_p = jnp.zeros((H_p, Dout_p), w2.dtype).at[:H, :Dout].set(w2)
  b2_p = jnp.zeros((1, Dout_p), b2.dtype).at[0, :Dout].set(b2)

  kernel = functools.partial(_mlp_kernel, slope=_LEAKY_SLOPE,
                             training=training, dropout_p=dropout_p, seed=seed)

  out = pl.pallas_call(
      kernel,
      out_shape=jax.ShapeDtypeStruct((N_p, Dout_p), x.dtype),
      grid_spec=pltpu.PrefetchScalarGridSpec(
          num_scalar_prefetch=0,
          grid=(N_p // TB,),
          in_specs=[
              pl.BlockSpec((TB, Din_p), lambda i: (i, 0)),
              pl.BlockSpec((Din_p, H_p), lambda i: (0, 0)),
              pl.BlockSpec((1, H_p), lambda i: (0, 0)),
              pl.BlockSpec((H_p, Dout_p), lambda i: (0, 0)),
              pl.BlockSpec((1, Dout_p), lambda i: (0, 0)),
          ],
          out_specs=pl.BlockSpec((TB, Dout_p), lambda i: (i, 0)),
      ),
      compiler_params=pltpu.CompilerParams(
          dimension_semantics=("parallel",)),  # v7x: shard batch tiles over both TCs
  )(x_p, w1_p, b1_p, w2_p, b2_p)

  return out[:N, :Dout]


def init_params(key, input_dim=100, n_hidden=256, output_dim=256):
  """PyTorch nn.Linear-style init: U(-1/sqrt(fan_in), 1/sqrt(fan_in)); weights stored (in, out)."""
  params = []
  dims = [(input_dim, n_hidden), (n_hidden, output_dim)]
  flat = []
  for i, (fin, fout) in enumerate(dims):
    k = jax.random.fold_in(key, i)
    kw, kb = jax.random.split(k)
    bound = 1.0 / (fin ** 0.5)
    w = jax.random.uniform(kw, (fin, fout), jnp.float32, -bound, bound)
    b = jax.random.uniform(kb, (fout,), jnp.float32, -bound, bound)
    flat.extend([w, b])
  params = tuple(flat)
  return params


def reference(x, params, *, slope=_LEAKY_SLOPE):
  """Plain-JAX reference mirroring FeatureExtractor.forward in eval mode (dropout = identity)."""
  w1, b1, w2, b2 = params
  h = x @ w1 + b1
  h = jnp.where(h > 0, h, slope * h)
  y = h @ w2 + b2
  y = jnp.where(y > 0, y, slope * y)
  return y


if __name__ == "__main__":
  key = jax.random.PRNGKey(0)
  kx, kp = jax.random.split(key)

  # Small shapes consistent with the module defaults: batch=8, input_dim=100,
  # n_hidden=256, output_dim=256.
  N, Din, H, Dout = 8, 100, 256, 256
  x = jax.random.normal(kx, (N, Din), jnp.float32)
  params = init_params(kp, input_dim=Din, n_hidden=H, output_dim=Dout)

  out = feature_extractor(x, params, training=False)   # eval mode: dropout is identity
  out = jax.block_until_ready(out)

  ref = reference(x, params)
  assert out.shape == (N, Dout), out.shape
  err = float(jnp.max(jnp.abs(out - ref)))
  assert jnp.allclose(out, ref, atol=1e-3, rtol=1e-3), f"max abs err {err}"
  print("KERNEL_OK")
</pallas_src>

<mosaic_0001>
module attributes {stable_mosaic.version = 11 : i64} {
  func.func @_mlp_kernel(%arg0: i32, %arg1: memref<8x128xf32, #tpu.memory_space<vmem>>, %arg2: memref<128x256xf32, #tpu.memory_space<vmem>>, %arg3: memref<1x256xf32, #tpu.memory_space<vmem>>, %arg4: memref<256x256xf32, #tpu.memory_space<vmem>>, %arg5: memref<1x256xf32, #tpu.memory_space<vmem>>, %arg6: memref<8x256xf32, #tpu.memory_space<vmem>>) attributes {dimension_semantics = [#tpu.dimension_semantics<parallel>], iteration_bounds = array<i64: 1>, scalar_prefetch = 0 : i64, scratch_operands = 0 : i64, tpu.core_type = #tpu.core_type<tc>, window_params = [{transform_indices = @transform_0, window_bounds = array<i64: 8, 128>}, {pipeline_mode = #tpu.pipeline_mode<synchronous>, transform_indices = @transform_1, window_bounds = array<i64: 128, 256>}, {pipeline_mode = #tpu.pipeline_mode<synchronous>, transform_indices = @transform_2, window_bounds = array<i64: 1, 256>}, {pipeline_mode = #tpu.pipeline_mode<synchronous>, transform_indices = @transform_3, window_bounds = array<i64: 256, 256>}, {pipeline_mode = #tpu.pipeline_mode<synchronous>, transform_indices = @transform_4, window_bounds = array<i64: 1, 256>}, {transform_indices = @transform_5, window_bounds = array<i64: 8, 256>}]} {
    %c0 = arith.constant 0 : index
    %c0_0 = arith.constant 0 : index
    %0 = vector.load %arg1[%c0, %c0_0] : memref<8x128xf32, #tpu.memory_space<vmem>>, vector<8x128xf32>
    %c0_1 = arith.constant 0 : index
    %c0_2 = arith.constant 0 : index
    %1 = vector.load %arg2[%c0_1, %c0_2] : memref<128x256xf32, #tpu.memory_space<vmem>>, vector<128x256xf32>
    %cst = arith.constant dense<0.000000e+00> : vector<8x256xf32>
    %2 = tpu.matmul %0, %1, %cst {dimension_numbers = #tpu.dot_dimension_numbers<[1], [0], [0], [1], [0, 0, 1, 1], [], []>} : vector<8x128xf32>, vector<128x256xf32>, vector<8x256xf32> -> vector<8x256xf32>
    %c0_3 = arith.constant 0 : index
    %c0_4 = arith.constant 0 : index
    %3 = vector.load %arg3[%c0_3, %c0_4] : memref<1x256xf32, #tpu.memory_space<vmem>>, vector<1x256xf32>
    %4 = vector.broadcast %3 : vector<1x256xf32> to vector<8x256xf32>
    %5 = arith.addf %2, %4 : vector<8x256xf32>
    %cst_5 = arith.constant 0.000000e+00 : f32
    %6 = vector.broadcast %cst_5 : f32 to vector<8x256xf32>
    %7 = arith.cmpf ogt, %5, %6 : vector<8x256xf32>
    %cst_6 = arith.constant 2.000000e-01 : f32
    %8 = vector.broadcast %cst_6 : f32 to vector<8x256xf32>
    %9 = arith.mulf %8, %5 : vector<8x256xf32>
    %10 = arith.select %7, %5, %9 : vector<8x256xi1>, vector<8x256xf32>
    %c0_7 = arith.constant 0 : index
    %c0_8 = arith.constant 0 : index
    %11 = vector.load %arg4[%c0_7, %c0_8] : memref<256x256xf32, #tpu.memory_space<vmem>>, vector<256x256xf32>
    %cst_9 = arith.constant dense<0.000000e+00> : vector<8x256xf32>
    %12 = tpu.matmul %10, %11, %cst_9 {dimension_numbers = #tpu.dot_dimension_numbers<[1], [0], [0], [1], [0, 0, 1, 1], [], []>} : vector<8x256xf32>, vector<256x256xf32>, vector<8x256xf32> -> vector<8x256xf32>
    %c0_10 = arith.constant 0 : index
    %c0_11 = arith.constant 0 : index
    %13 = vector.load %arg5[%c0_10, %c0_11] : memref<1x256xf32, #tpu.memory_space<vmem>>, vector<1x256xf32>
    %14 = vector.broadcast %13 : vector<1x256xf32> to vector<8x256xf32>
    %15 = arith.addf %12, %14 : vector<8x256xf32>
    %cst_12 = arith.constant 0.000000e+00 : f32
    %16 = vector.broadcast %cst_12 : f32 to vector<8x256xf32>
    %17 = arith.cmpf ogt, %15, %16 : vector<8x256xf32>
    %cst_13 = arith.constant 2.000000e-01 : f32
    %18 = vector.broadcast %cst_13 : f32 to vector<8x256xf32>
    %19 = arith.mulf %18, %15 : vector<8x256xf32>
    %20 = arith.select %17, %15, %19 : vector<8x256xi1>, vector<8x256xf32>
    %c0_14 = arith.constant 0 : index
    %c0_15 = arith.constant 0 : index
    %21 = vector.load %arg6[%c0_14, %c0_15] : memref<8x256xf32, #tpu.memory_space<vmem>>, vector<8x256xf32>
    tpu.vector_store %arg6[%c0_14, %c0_15], %20 {strides = array<i32>} : memref<8x256xf32, #tpu.memory_space<vmem>>, vector<8x256xf32>,
    return
  }
  func.func @transform_0(%arg0: i32) -> (i32, i32) {
    %c0_i32 = arith.constant 0 : i32
    %c0_i32_0 = arith.constant 0 : i32
    return %arg0, %c0_i32 : i32, i32
  }
  func.func @transform_1(%arg0: i32) -> (i32, i32) {
    %c0_i32 = arith.constant 0 : i32
    %c0_i32_0 = arith.constant 0 : i32
    %c0_i32_1 = arith.constant 0 : i32
    return %c0_i32, %c0_i32_0 : i32, i32
  }
  func.func @transform_2(%arg0: i32) -> (i32, i32) {
    %c0_i32 = arith.constant 0 : i32
    %c0_i32_0 = arith.constant 0 : i32
    %c0_i32_1 = arith.constant 0 : i32
    return %c0_i32, %c0_i32_0 : i32, i32
  }
  func.func @transform_3(%arg0: i32) -> (i32, i32) {
    %c0_i32 = arith.constant 0 : i32
    %c0_i32_0 = arith.constant 0 : i32
    %c0_i32_1 = arith.constant 0 : i32
    return %c0_i32, %c0_i32_0 : i32, i32
  }
  func.func @transform_4(%arg0: i32) -> (i32, i32) {
    %c0_i32 = arith.constant 0 : i32
    %c0_i32_0 = arith.constant 0 : i32
    %c0_i32_1 = arith.constant 0 : i32
    return %c0_i32, %c0_i32_0 : i32, i32
  }
  func.func @transform_5(%arg0: i32) -> (i32, i32) {
    %c0_i32 = arith.constant 0 : i32
    %c0_i32_0 = arith.constant 0 : i32
    return %arg0, %c0_i32 : i32, i32
  }
}

</mosaic_0001>

<bundles_post_ra>
// kernel: tpu_custom_call.1
= control target key start
LH: loop header
LB: loop body
LE: loop exit
PB: predicated region body
PF: predicated region fallthrough
CT: control target
= control target key end

     0   :  { %10 = vsyncpa [#allocation3], 0  ;;  %s501_s0 = inlined_call_operand.hbm [shape: f32[8,128], index: 0, kind: input, shape index: {}]   ;;  %s502_s1 = inlined_call_operand.hbm [shape: f32[128,256], index: 1, kind: input, shape index: {}]   ;;  %s503_s2 = inlined_call_operand.vmem [shape: f32[1,256], index: 2, kind: input, shape index: {}]   ;;  %s504_s3 = inlined_call_operand.hbm [shape: f32[256,256], index: 3, kind: input, shape index: {}]   ;;  %s505_s4 = inlined_call_operand.vmem [shape: f32[1,256], index: 4, kind: input, shape index: {}]   ;;  %s506_s5 = inlined_call_operand.hbm [shape: f32[8,256], index: 5, kind: output, shape index: {}]  }
   0x1   :  { %11 = vsyncpa [#allocation6], 0 }
   0x2   :  { %12 = vsyncpa [#allocation4], 0  ;;  %s446_s18 = smov [#allocation5]  }
   0x3   :  { %s28_s19 = sshll.u32 %s446_s18, 4  ;;  %s29_s19 = int_to_ptr.vmem [resolvable:$true] %s28_s19 }
   0x4   :  { %s368_s20 = scalar_lea.vmem %s29_s19, 4096  ;;  %p373_p1 = scmp.lt.s32.totalorder %s29_s19, %s29_s19 }
   0x5   :  { %p369_p0 = scmp.ne.s32.totalorder %s29_s19, %s368_s20  ;;  %p374_p2 = scmp.lt.s32.totalorder %s368_s20, %s368_s20 }
   0x7   :  { %p375_p3 = por %p374_p2, %p373_p1 }
   0x9   :  { %p376_p4 = pnand %p375_p3, %p369_p0 }
   0xb   :  { %379 = shalt.err (!%p376_p4)
}
   0xc   :  { %s447_s21 = smov 256   ;;  %s448_s22 = smov 16  }
   0xd   :  { %34 = dma.hbm_to_vmem [thread:$0]  %s502_s1, 4096, %s29_s19, [#allocation6], %s447_s21, %s447_s21, %s448_s22  }
   0xe   :  { %s449_s25 = smov [#allocation2]   ;;  %s450_s27 = smov [#allocation7]  }
   0xf   :  { %s19_s26 = sshll.u32 %s449_s25, 4  ;;  %s42_s28 = sshll.u32 %s450_s27, 4  ;;  %s20_s26 = int_to_ptr.vmem [resolvable:$true] %s19_s26  ;;  %s43_s28 = int_to_ptr.vmem [resolvable:$true] %s42_s28 }
  0x10   :  { %s388_s29 = scalar_lea.vmem %s20_s26, 128  ;;  %p393_p6 = scmp.lt.s32.totalorder %s20_s26, %s20_s26 }
  0x11   :  { %p389_p5 = scmp.ne.s32.totalorder %s20_s26, %s388_s29  ;;  %p394_p7 = scmp.lt.s32.totalorder %s388_s29, %s388_s29 }
  0x13   :  { %p395_p8 = por %p394_p7, %p393_p6 }
  0x15   :  { %p396_p9 = pnand %p395_p8, %p389_p5 }
  0x17   :  { %399 = shalt.err (!%p396_p9)
}
  0x18   :  { %22 = dma.hbm_to_vmem [thread:$0]  %s501_s0, 128, %s20_s26, [#allocation3]  }
  0x19   :  { %s408_s7 = scalar_lea.vmem %s43_s28, 8192  ;;  %p413_p11 = scmp.lt.s32.totalorder %s43_s28, %s43_s28 }
  0x1a   :  { %p409_p10 = scmp.ne.s32.totalorder %s43_s28, %s408_s7  ;;  %p414_p12 = scmp.lt.s32.totalorder %s408_s7, %s408_s7 }
  0x1c   :  { %p415_p13 = por %p414_p12, %p413_p11 }
  0x1e   :  { %p416_p0 = pnand %p415_p13, %p409_p10 }
  0x20   :  { %419 = shalt.err (!%p416_p0)
}
  0x21   :  { %48 = dma.hbm_to_vmem [thread:$0]  %s504_s3, 8192, %s43_s28, [#allocation6], %s447_s21, %s447_s21, %s448_s22  }
  0x22   :  { %440 = dma.done.wait [#allocation3], 128  }
  0x23   :  { %441 = vsyncadd [#allocation3], 4294967168 }
  0x24   :  { %442 = dma.done.wait [#allocation6], 12288  }
  0x25   :  { %443 = vsyncadd [#allocation6], 4294955008  ;;  %v451_v0 = vmov 0.0   ;;  %v92_v1 = vld [vmem:[#allocation5 + $0xf8] sm:$0xff]  ;;  %v91_v2 = vld [vmem:[#allocation5 + $0xf0] sm:$0xff] }
  0x26   :  { %169 = vmatprep.mubr.f32.mxu0 %v451_v0  ;;  %v90_v3 = vld [vmem:[#allocation5 + $0xe8] sm:$0xff]  ;;  %105 = vmatprep.subr.mxu0 %v92_v1  ;;  %v89_v4 = vld [vmem:[#allocation5 + $0xe0] sm:$0xff]  ;;  %v88_v5 = vld [vmem:[#allocation5 + $0xd8] sm:$0xff] }
  0x27   :  { %106 = vmatpush1.msra.mxu0 %v91_v2  ;;  %v87_v6 = vld [vmem:[#allocation5 + $0xd0] sm:$0xff]  ;;  %v86_v7 = vld [vmem:[#allocation5 + $0xc8] sm:$0xff]  ;;  %v85_v8 = vld [vmem:[#allocation5 + $0xc0] sm:$0xff] }
  0x28   :  { %107 = vmatprep.subr.mxu0 %v90_v3  ;;  %v84_v9 = vld [vmem:[#allocation5 + $0xb8] sm:$0xff]  ;;  %v83_v10 = vld [vmem:[#allocation5 + $0xb0] sm:$0xff]  ;;  %v82_v11 = vld [vmem:[#allocation5 + $0xa8] sm:$0xff] }
  0x29   :  { %108 = vmatpush1.msra.mxu0 %v89_v4  ;;  %v81_v12 = vld [vmem:[#allocation5 + $0xa0] sm:$0xff]  ;;  %v80_v13 = vld [vmem:[#allocation5 + $0x98] sm:$0xff]  ;;  %v79_v14 = vld [vmem:[#allocation5 + $0x90] sm:$0xff] }
  0x2a   :  { %109 = vmatprep.subr.mxu0 %v88_v5  ;;  %v213_v15 = vld [vmem:[#allocation7 + $0xf8] sm:$0xff]  ;;  %v212_v16 = vld [vmem:[#allocation7 + $0xf0] sm:$0xff]  ;;  %v211_v17 = vld [vmem:[#allocation7 + $0xe8] sm:$0xff] }
  0x2b   :  { %110 = vmatpush1.msra.mxu0 %v87_v6  ;;  %v78_v18 = vld [vmem:[#allocation5 + $0x88] sm:$0xff]  ;;  %258 = vmatprep.subr.mxu1 %v213_v15  ;;  %v210_v19 = vld [vmem:[#allocation7 + $0xe0] sm:$0xff]  ;;  %v209_v21 = vld [vmem:[#allocation7 + $0xd8] sm:$0xff] }
  0x2c   :  { %111 = vmatprep.subr.mxu0 %v86_v7  ;;  %v77_v20 = vld [vmem:[#allocation5 + $0x80] sm:$0xff]  ;;  %259 = vmatpush1.msra.mxu1 %v212_v16  ;;  %v76_v22 = vld [vmem:[#allocation5 + $0x78] sm:$0xff]  ;;  %v208_v23 = vld [vmem:[#allocation7 + $0xd0] sm:$0xff] }
  0x2d   :  { %112 = vmatpush1.msra.mxu0 %v85_v8  ;;  %260 = vmatprep.subr.mxu1 %v211_v17  ;;  %v75_v24 = vld [vmem:[#allocation5 + $0x70] sm:$0xff]  ;;  %v207_v25 = vld [vmem:[#allocation7 + $0xc8] sm:$0xff]  ;;  %v206_v27 = vld [vmem:[#allocation7 + $0xc0] sm:$0xff] }
  0x2e   :  { %113 = vmatprep.subr.mxu0 %v84_v9  ;;  %261 = vmatpush1.msra.mxu1 %v210_v19  ;;  %v74_v26 = vld [vmem:[#allocation5 + $0x68] sm:$0xff]  ;;  %v73_v28 = vld [vmem:[#allocation5 + $0x60] sm:$0xff]  ;;  %v205_v29 = vld [vmem:[#allocation7 + $0xb8] sm:$0xff] }
  0x2f   :  { %114 = vmatpush1.msra.mxu0 %v83_v10  ;;  %262 = vmatprep.subr.mxu1 %v209_v21  ;;  %v72_v30 = vld [vmem:[#allocation5 + $0x58] sm:$0xff]  ;;  %v204_v31 = vld [vmem:[#allocation7 + $0xb0] sm:$0xff]  ;;  %v203_v33 = vld [vmem:[#allocation7 + $0xa8] sm:$0xff] }
  0x30   :  { %115 = vmatprep.subr.mxu0 %v82_v11  ;;  %263 = vmatpush1.msra.mxu1 %v208_v23  ;;  %v71_v32 = vld [vmem:[#allocation5 + $0x50] sm:$0xff]  ;;  %v70_v34 = vld [vmem:[#allocation5 + $0x48] sm:$0xff]  ;;  %v202_v35 = vld [vmem:[#allocation7 + $0xa0] sm:$0xff] }
  0x31   :  { %116 = vmatpush1.msra.mxu0 %v81_v12  ;;  %264 = vmatprep.subr.mxu1 %v207_v25  ;;  %v69_v36 = vld [vmem:[#allocation5 + $0x40] sm:$0xff]  ;;  %v201_v37 = vld [vmem:[#allocation7 + $0x98] sm:$0xff]  ;;  %v200_v39 = vld [vmem:[#allocation7 + $0x90] sm:$0xff] }
  0x32   :  { %117 = vmatprep.subr.mxu0 %v80_v13  ;;  %265 = vmatpush1.msra.mxu1 %v206_v27  ;;  %v68_v38 = vld [vmem:[#allocation5 + $0x38] sm:$0xff]  ;;  %v67_v40 = vld [vmem:[#allocation5 + $0x30] sm:$0xff]  ;;  %v199_v41 = vld [vmem:[#allocation7 + $0x88] sm:$0xff] }
  0x33   :  { %118 = vmatpush1.msra.mxu0 %v79_v14  ;;  %266 = vmatprep.subr.mxu1 %v205_v29  ;;  %v66_v42 = vld [vmem:[#allocation5 + $0x28] sm:$0xff]  ;;  %v198_v43 = vld [vmem:[#allocation7 + $0x80] sm:$0xff]  ;;  %v197_v45 = vld [vmem:[#allocation7 + $0x78] sm:$0xff] }
  0x34   :  { %119 = vmatprep.subr.mxu0 %v78_v18  ;;  %267 = vmatpush1.msra.mxu1 %v204_v31  ;;  %v65_v44 = vld [vmem:[#allocation5 + $0x20] sm:$0xff]  ;;  %v64_v46 = vld [vmem:[#allocation5 + $0x18] sm:$0xff]  ;;  %v196_v47 = vld [vmem:[#allocation7 + $0x70] sm:$0xff] }
  0x35   :  { %120 = vmatpush1.msra.mxu0 %v77_v20  ;;  %268 = vmatprep.subr.mxu1 %v203_v33  ;;  %v63_v48 = vld [vmem:[#allocation5 + $0x10] sm:$0xff]  ;;  %v195_v49 = vld [vmem:[#allocation7 + $0x68] sm:$0xff]  ;;  %v194_v51 = vld [vmem:[#allocation7 + $0x60] sm:$0xff] }
  0x36   :  { %121 = vmatprep.subr.mxu0 %v76_v22  ;;  %269 = vmatpush1.msra.mxu1 %v202_v35  ;;  %v62_v50 = vld [vmem:[#allocation5 + $0x8] sm:$0xff]  ;;  %v61_v52 = vld [vmem:[#allocation5] sm:$0xff]  ;;  %v193_v53 = vld [vmem:[#allocation7 + $0x58] sm:$0xff] }
  0x37   :  { %122 = vmatpush1.msra.mxu0 %v75_v24  ;;  %270 = vmatprep.subr.mxu1 %v201_v37  ;;  %v60_v54 = vld [vmem:[#allocation2] sm:$0xff]  ;;  %v192_v55 = vld [vmem:[#allocation7 + $0x50] sm:$0xff]  ;;  %v191_v56 = vld [vmem:[#allocation7 + $0x48] sm:$0xff] }
  0x38   :  { %123 = vmatprep.subr.mxu0 %v74_v26  ;;  %271 = vmatpush1.msra.mxu1 %v200_v39  ;;  %v190_v57 = vld [vmem:[#allocation7 + $0x40] sm:$0xff]  ;;  %v189_v58 = vld [vmem:[#allocation7 + $0x38] sm:$0xff]  ;;  %v188_v59 = vld [vmem:[#allocation7 + $0x30] sm:$0xff] }
  0x39   :  { %124 = vmatpush1.msra.mxu0 %v73_v28  ;;  %272 = vmatprep.subr.mxu1 %v199_v41  ;;  %v187_v60 = vld [vmem:[#allocation7 + $0x28] sm:$0xff]  ;;  %v186_v61 = vld [vmem:[#allocation7 + $0x20] sm:$0xff]  ;;  %v185_v62 = vld [vmem:[#allocation7 + $0x18] sm:$0xff] }
  0x3a   :  { %125 = vmatprep.subr.mxu0 %v72_v30  ;;  %273 = vmatpush1.msra.mxu1 %v198_v43  ;;  %v184_v63 = vld [vmem:[#allocation7 + $0x10] sm:$0xff]  ;;  %v183_v0 = vld [vmem:[#allocation7 + $0x8] sm:$0xff]  ;;  %v182_v1 = vld [vmem:[#allocation7] sm:$0xff] }
  0x3b   :  { %126 = vmatpush1.msra.mxu0 %v71_v32  ;;  %274 = vmatprep.subr.mxu1 %v197_v45  ;;  %v245_v2 = vld [vmem:[#allocation7 + $0x1f8] sm:$0xff]  ;;  %v244_v3 = vld [vmem:[#allocation7 + $0x1f0] sm:$0xff]  ;;  %v243_v4 = vld [vmem:[#allocation7 + $0x1e8] sm:$0xff] }
  0x3c   :  { %127 = vmatprep.subr.mxu0 %v70_v34  ;;  %275 = vmatpush1.msra.mxu1 %v196_v47  ;;  %v242_v5 = vld [vmem:[#allocation7 + $0x1e0] sm:$0xff]  ;;  %v241_v6 = vld [vmem:[#allocation7 + $0x1d8] sm:$0xff]  ;;  %v240_v7 = vld [vmem:[#allocation7 + $0x1d0] sm:$0xff]  ;;  %v95_v34 = vlaneseq }
  0x3d   :  { %128 = vmatpush1.msra.mxu0 %v69_v36  ;;  %276 = vmatprep.subr.mxu1 %v195_v49  ;;  %v239_v8 = vld [vmem:[#allocation7 + $0x1c8] sm:$0xff]  ;;  %v238_v9 = vld [vmem:[#allocation7 + $0x1c0] sm:$0xff]  ;;  %v237_v10 = vld [vmem:[#allocation7 + $0x1b8] sm:$0xff] }
  0x3e   :  { %129 = vmatprep.subr.mxu0 %v68_v38  ;;  %277 = vmatpush1.msra.mxu1 %v194_v51  ;;  %v236_v11 = vld [vmem:[#allocation7 + $0x1b0] sm:$0xff]  ;;  %v235_v12 = vld [vmem:[#allocation7 + $0x1a8] sm:$0xff]  ;;  %v234_v13 = vld [vmem:[#allocation7 + $0x1a0] sm:$0xff]  ;;  %v96_v35 = vshrl.u32 %v95_v34, 7 }
  0x3f   :  { %130 = vmatpush1.msra.mxu0 %v67_v40  ;;  %278 = vmatprep.subr.mxu1 %v193_v53  ;;  %v233_v14 = vld [vmem:[#allocation7 + $0x198] sm:$0xff]  ;;  %v232_v15 = vld [vmem:[#allocation7 + $0x190] sm:$0xff]  ;;  %v231_v16 = vld [vmem:[#allocation7 + $0x188] sm:$0xff] }
  0x40   :  { %131 = vmatprep.subr.mxu0 %v66_v42  ;;  %279 = vmatpush1.msra.mxu1 %v192_v55  ;;  %v230_v17 = vld [vmem:[#allocation7 + $0x180] sm:$0xff]  ;;  %v229_v18 = vld [vmem:[#allocation7 + $0x178] sm:$0xff]  ;;  %v228_v19 = vld [vmem:[#allocation7 + $0x170] sm:$0xff]  ;;  %v97_v36 = vsub.s32 0, %v96_v35  ;;  %v101_v38 = vsub.s32 1, %v96_v35 }
  0x41   :  { %132 = vmatpush1.msra.mxu0 %v65_v44  ;;  %280 = vmatprep.subr.mxu1 %v191_v56  ;;  %v227_v20 = vld [vmem:[#allocation7 + $0x168] sm:$0xff]  ;;  %v226_v21 = vld [vmem:[#allocation7 + $0x160] sm:$0xff]  ;;  %v225_v22 = vld [vmem:[#allocation7 + $0x158] sm:$0xff] }
  0x42   :  { %133 = vmatprep.subr.mxu0 %v64_v46  ;;  %281 = vmatpush1.msra.mxu1 %v190_v57  ;;  %v224_v23 = vld [vmem:[#allocation7 + $0x150] sm:$0xff]  ;;  %v223_v24 = vld [vmem:[#allocation7 + $0x148] sm:$0xff]  ;;  %v222_v25 = vld [vmem:[#allocation7 + $0x140] sm:$0xff] }
  0x43   :  { %134 = vmatpush1.msra.mxu0 %v63_v48  ;;  %282 = vmatprep.subr.mxu1 %v189_v58  ;;  %v221_v26 = vld [vmem:[#allocation7 + $0x138] sm:$0xff]  ;;  %v220_v27 = vld [vmem:[#allocation7 + $0x130] sm:$0xff]  ;;  %v219_v28 = vld [vmem:[#allocation7 + $0x128] sm:$0xff] }
  0x44   :  { %135 = vmatprep.subr.mxu0 %v62_v50  ;;  %283 = vmatpush1.msra.mxu1 %v188_v59  ;;  %v218_v29 = vld [vmem:[#allocation7 + $0x120] sm:$0xff]  ;;  %v217_v30 = vld [vmem:[#allocation7 + $0x118] sm:$0xff]  ;;  %v216_v31 = vld [vmem:[#allocation7 + $0x110] sm:$0xff] }
  0x45   :  { %136 = vmatpush1.msra.mxu0 %v61_v52  ;;  %284 = vmatprep.subr.mxu1 %v187_v60  ;;  %v215_v32 = vld [vmem:[#allocation7 + $0x108] sm:$0xff]  ;;  %v214_v33 = vld [vmem:[#allocation7 + $0x100] sm:$0xff]  ;;  %v93_v37 = vld [vmem:[%s503_s2] sm:$0x3]  ;;  %s452_s2 = smov [#allocation8]  }
  0x46   :  { %170 = vmatmul.mubr.f32.vlgmr.msra.gmra.mxu0 %v60_v54  ;;  %285 = vmatpush1.msra.mxu1 %v186_v61  ;;  %v98_v39 = vrot.slane %v93_v37, %v97_v36  ;;  %v102_v40 = vrot.slane %v93_v37, %v101_v38  ;;  %v246_v49 = vld [vmem:[%s505_s4] sm:$0x3]  ;;  %s343_s11 = sshll.u32 %s452_s2, 4  ;;  %s344_s11 = int_to_ptr.vmem [resolvable:$true] %s343_s11 }
  0x47   :  { %286 = vmatprep.subr.mxu1 %v185_v62  ;;  %v251_v50 = vrot.slane %v246_v49, %v97_v36  ;;  %v255_v51 = vrot.slane %v246_v49, %v101_v38  ;;  %s420_s12 = scalar_lea.vmem %s344_s11, 256  ;;  %p425_p2 = scmp.lt.s32.totalorder %s344_s11, %s344_s11 }
  0x48   :  { %287 = vmatpush1.msra.mxu1 %v184_v63  ;;  %p421_p1 = scmp.ne.s32.totalorder %s344_s11, %s420_s12  ;;  %p426_p3 = scmp.lt.s32.totalorder %s420_s12, %s420_s12 }
  0x49   :  { %288 = vmatprep.subr.mxu1 %v183_v0 }
  0x4a   :  { %289 = vmatpush1.msra.mxu1 %v182_v1  ;;  %p427_p4 = por %p426_p3, %p425_p2 }
  0x4b   :  { %290 = vmatprep.subr.mxu1 %v245_v2 }
  0x4c   :  { %291 = vmatpush2.msra.mxu1 %v244_v3  ;;  %p428_p5 = pnand %p427_p4, %p421_p1 }
  0x4d   :  { %292 = vmatprep.subr.mxu1 %v243_v4 }
  0x4e   :  { %293 = vmatpush2.msra.mxu1 %v242_v5 }
  0x4f   :  { %294 = vmatprep.subr.mxu1 %v241_v6 }
  0x50   :  { %295 = vmatpush2.msra.mxu1 %v240_v7 }
  0x51   :  { %296 = vmatprep.subr.mxu1 %v239_v8 }
  0x52   :  { %297 = vmatpush2.msra.mxu1 %v238_v9 }
  0x53   :  { %298 = vmatprep.subr.mxu1 %v237_v10 }
  0x54   :  { %299 = vmatpush2.msra.mxu1 %v236_v11 }
  0x55   :  { %300 = vmatprep.subr.mxu1 %v235_v12 }
  0x56   :  { %301 = vmatpush2.msra.mxu1 %v234_v13 }
  0x57   :  { %302 = vmatprep.subr.mxu1 %v233_v14 }
  0x58   :  { %303 = vmatpush2.msra.mxu1 %v232_v15 }
  0x59   :  { %304 = vmatprep.subr.mxu1 %v231_v16 }
  0x5a   :  { %305 = vmatpush2.msra.mxu1 %v230_v17 }
  0x5b   :  { %306 = vmatprep.subr.mxu1 %v229_v18 }
  0x5c   :  { %307 = vmatpush2.msra.mxu1 %v228_v19 }
  0x5d   :  { %308 = vmatprep.subr.mxu1 %v227_v20 }
  0x5e   :  { %309 = vmatpush2.msra.mxu1 %v226_v21 }
  0x5f   :  { %310 = vmatprep.subr.mxu1 %v225_v22 }
  0x60   :  { %311 = vmatpush2.msra.mxu1 %v224_v23 }
  0x61   :  { %312 = vmatprep.subr.mxu1 %v223_v24 }
  0x62   :  { %313 = vmatpush2.msra.mxu1 %v222_v25 }
  0x63   :  { %314 = vmatprep.subr.mxu1 %v221_v26 }
  0x64   :  { %315 = vmatpush2.msra.mxu1 %v220_v27 }
  0x65   :  { %316 = vmatprep.subr.mxu1 %v219_v28 }
  0x66   :  { %317 = vmatpush2.msra.mxu1 %v218_v29 }
  0x67   :  { %318 = vmatprep.subr.mxu1 %v217_v30 }
  0x68   :  { %319 = vmatpush2.msra.mxu1 %v216_v31 }
  0x69   :  { %320 = vmatprep.subr.mxu1 %v215_v32 }
  0x6a   :  { %321 = vmatpush2.msra.mxu1 %v214_v33 }
 0x106   :  { %v171_v41 = vpop.f32.mrf.mxu0 }
 0x107   :  { %v172_v42 = vadd.f32 %v171_v41, %v98_v39 }
 0x108   :  { %v173_v43 = vpop.f32.mrf.mxu0 }
 0x109   :  { %v174_v44 = vadd.f32 %v173_v43, %v102_v40  ;;  %v178_v45 = vmul.f32 0.2, %v172_v42  ;;  %vm176_vm1 = vcmp.gt.f32.partialorder %v172_v42, 0.0 }
 0x10b   :  { %vm177_vm0 = vcmp.gt.f32.partialorder %v174_v44, 0.0  ;;  %v179_v46 = vmul.f32 0.2, %v174_v44  ;;  %v180_v48 = vsel %vm176_vm1, %v172_v42, %v178_v45 }
 0x10d   :  { %v181_v47 = vsel %vm177_vm0, %v174_v44, %v179_v46 }
 0x10e   :  { %322 = vmatprep.mubr.f32.mxu1 %v181_v47 }
 0x10f   :  { %323 = vmatmul.mubr.f32.vlgmr.msra.gmra.mxu1 %v180_v48 }
 0x1cf   :  { %v324_v52 = vpop.f32.mrf.mxu1 }
 0x1d0   :  { %v325_v53 = vadd.f32 %v324_v52, %v251_v50 }
 0x1d1   :  { %v326_v54 = vpop.f32.mrf.mxu1 }
 0x1d2   :  { %vm329_vm2 = vcmp.gt.f32.partialorder %v325_v53, 0.0  ;;  %v331_v55 = vmul.f32 0.2, %v325_v53  ;;  %v327_v56 = vadd.f32 %v326_v54, %v255_v51 }
 0x1d4   :  { %vm330_vm3 = vcmp.gt.f32.partialorder %v327_v56, 0.0  ;;  %v332_v57 = vmul.f32 0.2, %v327_v56  ;;  %v333_v58 = vsel %vm329_vm2, %v325_v53, %v331_v55 }
 0x1d5   :  { %335 = vst [vmem:[#allocation8] sm:$0xff] %v333_v58 }
 0x1d6   :  { %v334_v59 = vsel %vm330_vm3, %v327_v56, %v332_v57 }
 0x1d7   :  { %336 = vst [vmem:[#allocation8 + $0x8] sm:$0xff] %v334_v59 }
 0x1d8   :  { %431 = shalt.err (!%p428_p5)
}
 0x1d9   :  { %346 = dma.vmem_to_hbm [thread:$0]  %s344_s11, 256, %s506_s5, [#allocation4]  }
 0x1da   :  { %444 = dma.done.wait [#allocation4], 256  }
 0x1db   :  { %445 = vsyncadd [#allocation4], 4294967040 }
 0x1dc   :  { %350 = vsyncpa [#allocation3], 1 }
 0x1dd   :  { %351 = vsyncpa [#allocation6], 1 }
 0x1de   :  { %352 = vsyncpa [#allocation4], 1 }

</bundles_post_ra>
